<compile_context>
chip_gen: v7x
topology: tpu7x:2x2x1
jax: 0.10.0
libtpu: 0.0.40
codegen_flags: <defaults>
</compile_context>

<pallas_src>
import jax
import jax.numpy as jnp
from jax.experimental import pallas as pl
from jax.experimental.pallas import tpu as pltpu


def _round_up(x, m):
    return (x + m - 1) // m * m


def swav_kernel(x0_ref, x1_ref,        # (B, tk) bf16 pixel tiles, one per view
                wf_ref, bf_ref,        # feature stand-in: (tk, F) bf16, (1, F) f32
                w0_ref, b0_ref,        # projection linear 1: (F, Hm) bf16, (1, Hm) f32
                g_ref, be_ref,         # BatchNorm1d gamma / beta: (1, Hm) f32
                w1_ref, b1_ref,        # projection linear 2: (Hm, Dp) bf16, (1, Dp) f32
                wp_ref,                # prototypes (no bias): (Dp, Pp) bf16
                z_ref, p_ref,          # outputs: (2, B, Dp) f32, (2, B, Pp) f32
                acc0_ref, acc1_ref):   # (B, F) f32 accumulators (one per view)
    k = pl.program_id(0)
    nk = pl.num_programs(0)

    @pl.when(k == 0)
    def _init():
        acc0_ref[...] = jnp.zeros_like(acc0_ref)
        acc1_ref[...] = jnp.zeros_like(acc1_ref)

    # K-tiled first matmul: pixels -> features, accumulated in f32.
    wf_t = wf_ref[...]
    acc0_ref[...] += jnp.dot(x0_ref[...], wf_t, preferred_element_type=jnp.float32)
    acc1_ref[...] += jnp.dot(x1_ref[...], wf_t, preferred_element_type=jnp.float32)

    @pl.when(k == nk - 1)
    def _epilogue():
        b = acc0_ref.shape[0]
        inv_n = 1.0 / (2 * b)

        w0 = w0_ref[...]
        b0 = b0_ref[...]
        feat0 = acc0_ref[...] + bf_ref[...]
        feat1 = acc1_ref[...] + bf_ref[...]
        h0 = jnp.dot(feat0.astype(jnp.bfloat16), w0, preferred_element_type=jnp.float32) + b0
        h1 = jnp.dot(feat1.astype(jnp.bfloat16), w0, preferred_element_type=jnp.float32) + b0

        # BatchNorm1d (training) stats in one pass over both views: E[x], E[x^2].
        mean = (jnp.sum(h0, axis=0, keepdims=True)
                + jnp.sum(h1, axis=0, keepdims=True)) * inv_n
        msq = (jnp.sum(h0 * h0, axis=0, keepdims=True)
               + jnp.sum(h1 * h1, axis=0, keepdims=True)) * inv_n
        var = msq - mean * mean
        scale = jax.lax.rsqrt(var + 1e-5) * g_ref[...]
        shift = be_ref[...] - mean * scale

        w1 = w1_ref[...]
        b1 = b1_ref[...]
        wp = wp_ref[...]

        def head(h):
            hr = jnp.maximum(h * scale + shift, 0.0)                      # BN + ReLU
            z = jnp.dot(hr.astype(jnp.bfloat16), w1,
                        preferred_element_type=jnp.float32) + b1
            # F.normalize(x, dim=1, p=2): x / max(||x||, 1e-12) == x * rsqrt(max(||x||^2, 1e-24))
            zn = z * jax.lax.rsqrt(
                jnp.maximum(jnp.sum(z * z, axis=1, keepdims=True), 1e-24))
            pr = jnp.dot(zn.astype(jnp.bfloat16), wp,
                         preferred_element_type=jnp.float32)
            return zn, pr

        z0, p0 = head(h0)
        z1, p1 = head(h1)
        z_ref[0] = z0
        z_ref[1] = z1
        p_ref[0] = p0
        p_ref[1] = p1


def swav_forward(inputs, params):
    """inputs: [view0, view1] NCHW arrays. Returns (normalized_embedding, prototype_scores)."""
    v0, v1 = inputs
    b = v0.shape[0]
    chw = int(v0.shape[1] * v0.shape[2] * v0.shape[3])
    n = 2 * b

    # Free reshape (contiguous) + bf16 cast; no HBM concat of the two views.
    x0 = v0.reshape(b, chw).astype(jnp.bfloat16)
    x1 = v1.reshape(b, chw).astype(jnp.bfloat16)

    wf, bf, w0, b0, g, be, w1, b1, wp = params
    feat_dim = wf.shape[1]
    hidden = w0.shape[1]
    out_dim = w1.shape[1]
    n_proto = wp.shape[1]

    # Pad output / prototype lane dims to multiples of 128 for lane-dense stores.
    d_pad = _round_up(out_dim, 128)
    p_pad = _round_up(n_proto, 128)
    wf_b = wf.astype(jnp.bfloat16)
    w0_b = w0.astype(jnp.bfloat16)
    w1_b = jnp.pad(w1.astype(jnp.bfloat16), ((0, 0), (0, d_pad - out_dim)))
    b1_p = jnp.pad(b1, ((0, 0), (0, d_pad - out_dim)))
    wp_b = jnp.pad(wp.astype(jnp.bfloat16),
                   ((0, d_pad - out_dim), (0, p_pad - n_proto)))

    # K tile: largest of 512/256/128 that divides C*H*W (sized well under the
    # v7x 64 MiB VMEM budget at realistic feature widths); fall back to a single tile.
    tk = chw
    for cand in (512, 256, 128):
        if chw % cand == 0:
            tk = cand
            break
    grid = (chw // tk,)

    def resident(shape):
        return pl.BlockSpec(shape, lambda k: (0, 0))

    in_specs = [
        pl.BlockSpec((b, tk), lambda k: (0, k)),          # x0 tile
        pl.BlockSpec((b, tk), lambda k: (0, k)),          # x1 tile
        pl.BlockSpec((tk, feat_dim), lambda k: (k, 0)),   # wf tile
        resident(bf.shape),
        resident(w0_b.shape),
        resident(b0.shape),
        resident(g.shape),
        resident(be.shape),
        resident(w1_b.shape),
        resident(b1_p.shape),
        resident(wp_b.shape),
    ]
    out_specs = (
        pl.BlockSpec((2, b, d_pad), lambda k: (0, 0, 0)),
        pl.BlockSpec((2, b, p_pad), lambda k: (0, 0, 0)),
    )

    grid_spec = pltpu.PrefetchScalarGridSpec(
        num_scalar_prefetch=0,
        grid=grid,
        in_specs=in_specs,
        out_specs=out_specs,
        scratch_shapes=[pltpu.VMEM((b, feat_dim), jnp.float32),
                        pltpu.VMEM((b, feat_dim), jnp.float32)],
    )

    flops = (2 * n * chw * feat_dim + 2 * n * feat_dim * hidden
             + 2 * n * hidden * d_pad + 2 * n * d_pad * p_pad)
    bytes_accessed = (
        2 * (x0.size + x1.size + wf_b.size + w0_b.size + w1_b.size + wp_b.size)   # bf16
        + 4 * (bf.size + b0.size + g.size + be.size + b1_p.size)                  # f32 params
        + 4 * (2 * b * d_pad + 2 * b * p_pad))                                    # f32 outputs
    cost = pl.CostEstimate(flops=int(flops),
                           transcendentals=int(hidden + n),
                           bytes_accessed=int(bytes_accessed))

    # TODO(synk): a 'parallel' batch-tile grid axis (v7x dual-TC) is omitted here because
    # BatchNorm couples all rows and the test batch is tiny; the K axis is the reduction.
    z_pad, p_out = pl.pallas_call(
        swav_kernel,
        out_shape=(jax.ShapeDtypeStruct((2, b, d_pad), jnp.float32),
                   jax.ShapeDtypeStruct((2, b, p_pad), jnp.float32)),
        grid_spec=grid_spec,
        compiler_params=pltpu.CompilerParams(
            dimension_semantics=("arbitrary",),
            vmem_limit_bytes=48 * 1024 * 1024),
        cost_estimate=cost,
    )(x0, x1, wf_b, bf, w0_b, b0, g, be, w1_b, b1_p, wp_b)

    z = z_pad.reshape(n, d_pad)[:, :out_dim]
    p = p_out.reshape(n, p_pad)[:, :n_proto]
    return z, p


def init_params(key, chw, feat_dim, hidden_mlp, output_dim, nmb_prototypes):
    ks = jax.random.split(key, 5)
    wf = jax.random.normal(ks[0], (chw, feat_dim), jnp.float32) * (1.0 / jnp.sqrt(chw))
    bf = jnp.zeros((1, feat_dim), jnp.float32)
    w0 = jax.random.normal(ks[1], (feat_dim, hidden_mlp), jnp.float32) * (1.0 / jnp.sqrt(feat_dim))
    b0 = jnp.zeros((1, hidden_mlp), jnp.float32)
    g = jnp.ones((1, hidden_mlp), jnp.float32)       # BatchNorm1d weight
    be = jnp.zeros((1, hidden_mlp), jnp.float32)     # BatchNorm1d bias
    w1 = jax.random.normal(ks[2], (hidden_mlp, output_dim), jnp.float32) * (1.0 / jnp.sqrt(hidden_mlp))
    b1 = jnp.zeros((1, output_dim), jnp.float32)
    wp = jax.random.normal(ks[3], (output_dim, nmb_prototypes), jnp.float32) * (1.0 / jnp.sqrt(output_dim))
    return (wf, bf, w0, b0, g, be, w1, b1, wp)


if __name__ == "__main__":
    # small shapes: batch=2 per view, channels=4, spatial=16
    B, C, H, W = 2, 4, 16, 16
    feat_dim, hidden_mlp, output_dim, nmb_prototypes = 64, 64, 32, 128

    key = jax.random.PRNGKey(0)
    k0, k1, kp = jax.random.split(key, 3)
    view0 = jax.random.normal(k0, (B, C, H, W), jnp.float32)
    view1 = jax.random.normal(k1, (B, C, H, W), jnp.float32)
    params = init_params(kp, C * H * W, feat_dim, hidden_mlp, output_dim, nmb_prototypes)

    z, p = swav_forward([view0, view1], params)
    jax.block_until_ready((z, p))

    assert z.shape == (2 * B, output_dim)
    assert p.shape == (2 * B, nmb_prototypes)
    print("KERNEL_OK")
</pallas_src>

<mosaic_0001>
module attributes {stable_mosaic.version = 11 : i64} {
  func.func @swav_kernel(%arg0: i32, %arg1: memref<2x512xbf16, #tpu.memory_space<vmem>>, %arg2: memref<2x512xbf16, #tpu.memory_space<vmem>>, %arg3: memref<512x64xbf16, #tpu.memory_space<vmem>>, %arg4: memref<1x64xf32, #tpu.memory_space<vmem>>, %arg5: memref<64x64xbf16, #tpu.memory_space<vmem>>, %arg6: memref<1x64xf32, #tpu.memory_space<vmem>>, %arg7: memref<1x64xf32, #tpu.memory_space<vmem>>, %arg8: memref<1x64xf32, #tpu.memory_space<vmem>>, %arg9: memref<64x128xbf16, #tpu.memory_space<vmem>>, %arg10: memref<1x128xf32, #tpu.memory_space<vmem>>, %arg11: memref<128x128xbf16, #tpu.memory_space<vmem>>, %arg12: memref<2x2x128xf32, #tpu.memory_space<vmem>>, %arg13: memref<2x2x128xf32, #tpu.memory_space<vmem>>, %arg14: memref<2x64xf32, #tpu.memory_space<vmem>>, %arg15: memref<2x64xf32, #tpu.memory_space<vmem>>) attributes {dimension_semantics = [#tpu.dimension_semantics<arbitrary>], iteration_bounds = array<i64: 2>, scalar_prefetch = 0 : i64, scratch_operands = 2 : i64, tpu.core_type = #tpu.core_type<tc>, window_params = [{transform_indices = @transform_0, window_bounds = array<i64: 2, 512>}, {transform_indices = @transform_1, window_bounds = array<i64: 2, 512>}, {transform_indices = @transform_2, window_bounds = array<i64: 512, 64>}, {pipeline_mode = #tpu.pipeline_mode<synchronous>, transform_indices = @transform_3, window_bounds = array<i64: 1, 64>}, {pipeline_mode = #tpu.pipeline_mode<synchronous>, transform_indices = @transform_4, window_bounds = array<i64: 64, 64>}, {pipeline_mode = #tpu.pipeline_mode<synchronous>, transform_indices = @transform_5, window_bounds = array<i64: 1, 64>}, {pipeline_mode = #tpu.pipeline_mode<synchronous>, transform_indices = @transform_6, window_bounds = array<i64: 1, 64>}, {pipeline_mode = #tpu.pipeline_mode<synchronous>, transform_indices = @transform_7, window_bounds = array<i64: 1, 64>}, {pipeline_mode = #tpu.pipeline_mode<synchronous>, transform_indices = @transform_8, window_bounds = array<i64: 64, 128>}, {pipeline_mode = #tpu.pipeline_mode<synchronous>, transform_indices = @transform_9, window_bounds = array<i64: 1, 128>}, {pipeline_mode = #tpu.pipeline_mode<synchronous>, transform_indices = @transform_10, window_bounds = array<i64: 128, 128>}, {pipeline_mode = #tpu.pipeline_mode<synchronous>, transform_indices = @transform_11, window_bounds = array<i64: 2, 2, 128>}, {pipeline_mode = #tpu.pipeline_mode<synchronous>, transform_indices = @transform_12, window_bounds = array<i64: 2, 2, 128>}]} {
    %c0_i32 = arith.constant 0 : i32
    %0 = arith.cmpi eq, %arg0, %c0_i32 : i32
    %1 = arith.extui %0 : i1 to i32
    %c0_i32_0 = arith.constant 0 : i32
    %2 = arith.cmpi ne, %1, %c0_i32_0 : i32
    scf.if %2 {
      %cst_16 = arith.constant 0.000000e+00 : f32
      %17 = vector.broadcast %cst_16 : f32 to vector<2x64xf32>
      %c0_17 = arith.constant 0 : index
      %c0_18 = arith.constant 0 : index
      %18 = vector.load %arg14[%c0_17, %c0_18] : memref<2x64xf32, #tpu.memory_space<vmem>>, vector<2x64xf32>
      tpu.vector_store %arg14[%c0_17, %c0_18], %17 {strides = array<i32>} : memref<2x64xf32, #tpu.memory_space<vmem>>, vector<2x64xf32>,
      %cst_19 = arith.constant 0.000000e+00 : f32
      %19 = vector.broadcast %cst_19 : f32 to vector<2x64xf32>
      %c0_20 = arith.constant 0 : index
      %c0_21 = arith.constant 0 : index
      %20 = vector.load %arg15[%c0_20, %c0_21] : memref<2x64xf32, #tpu.memory_space<vmem>>, vector<2x64xf32>
      tpu.vector_store %arg15[%c0_20, %c0_21], %19 {strides = array<i32>} : memref<2x64xf32, #tpu.memory_space<vmem>>, vector<2x64xf32>,
    } else {
    }
    %c0 = arith.constant 0 : index
    %c0_1 = arith.constant 0 : index
    %3 = vector.load %arg3[%c0, %c0_1] : memref<512x64xbf16, #tpu.memory_space<vmem>>, vector<512x64xbf16>
    %c0_2 = arith.constant 0 : index
    %c0_3 = arith.constant 0 : index
    %4 = vector.load %arg14[%c0_2, %c0_3] : memref<2x64xf32, #tpu.memory_space<vmem>>, vector<2x64xf32>
    %c0_4 = arith.constant 0 : index
    %c0_5 = arith.constant 0 : index
    %5 = vector.load %arg1[%c0_4, %c0_5] : memref<2x512xbf16, #tpu.memory_space<vmem>>, vector<2x512xbf16>
    %cst = arith.constant dense<0.000000e+00> : vector<2x64xf32>
    %6 = tpu.matmul %5, %3, %cst {dimension_numbers = #tpu.dot_dimension_numbers<[1], [0], [0], [1], [0, 0, 1, 1], [], []>} : vector<2x512xbf16>, vector<512x64xbf16>, vector<2x64xf32> -> vector<2x64xf32>
    %7 = arith.addf %4, %6 : vector<2x64xf32>
    %c0_6 = arith.constant 0 : index
    %c0_7 = arith.constant 0 : index
    %8 = vector.load %arg14[%c0_6, %c0_7] : memref<2x64xf32, #tpu.memory_space<vmem>>, vector<2x64xf32>
    tpu.vector_store %arg14[%c0_6, %c0_7], %7 {strides = array<i32>} : memref<2x64xf32, #tpu.memory_space<vmem>>, vector<2x64xf32>,
    %c0_8 = arith.constant 0 : index
    %c0_9 = arith.constant 0 : index
    %9 = vector.load %arg15[%c0_8, %c0_9] : memref<2x64xf32, #tpu.memory_space<vmem>>, vector<2x64xf32>
    %c0_10 = arith.constant 0 : index
    %c0_11 = arith.constant 0 : index
    %10 = vector.load %arg2[%c0_10, %c0_11] : memref<2x512xbf16, #tpu.memory_space<vmem>>, vector<2x512xbf16>
    %cst_12 = arith.constant dense<0.000000e+00> : vector<2x64xf32>
    %11 = tpu.matmul %10, %3, %cst_12 {dimension_numbers = #tpu.dot_dimension_numbers<[1], [0], [0], [1], [0, 0, 1, 1], [], []>} : vector<2x512xbf16>, vector<512x64xbf16>, vector<2x64xf32> -> vector<2x64xf32>
    %12 = arith.addf %9, %11 : vector<2x64xf32>
    %c0_13 = arith.constant 0 : index
    %c0_14 = arith.constant 0 : index
    %13 = vector.load %arg15[%c0_13, %c0_14] : memref<2x64xf32, #tpu.memory_space<vmem>>, vector<2x64xf32>
    tpu.vector_store %arg15[%c0_13, %c0_14], %12 {strides = array<i32>} : memref<2x64xf32, #tpu.memory_space<vmem>>, vector<2x64xf32>,
    %c1_i32 = arith.constant 1 : i32
    %14 = arith.cmpi eq, %arg0, %c1_i32 : i32
    %15 = arith.extui %14 : i1 to i32
    %c0_i32_15 = arith.constant 0 : i32
    %16 = arith.cmpi ne, %15, %c0_i32_15 : i32
    scf.if %16 {
      %c0_16 = arith.constant 0 : index
      %c0_17 = arith.constant 0 : index
      %17 = vector.load %arg5[%c0_16, %c0_17] : memref<64x64xbf16, #tpu.memory_space<vmem>>, vector<64x64xbf16>
      %c0_18 = arith.constant 0 : index
      %c0_19 = arith.constant 0 : index
      %18 = vector.load %arg6[%c0_18, %c0_19] : memref<1x64xf32, #tpu.memory_space<vmem>>, vector<1x64xf32>
      %c0_20 = arith.constant 0 : index
      %c0_21 = arith.constant 0 : index
      %19 = vector.load %arg14[%c0_20, %c0_21] : memref<2x64xf32, #tpu.memory_space<vmem>>, vector<2x64xf32>
      %c0_22 = arith.constant 0 : index
      %c0_23 = arith.constant 0 : index
      %20 = vector.load %arg4[%c0_22, %c0_23] : memref<1x64xf32, #tpu.memory_space<vmem>>, vector<1x64xf32>
      %21 = vector.broadcast %20 : vector<1x64xf32> to vector<2x64xf32>
      %22 = arith.addf %19, %21 : vector<2x64xf32>
      %c0_24 = arith.constant 0 : index
      %c0_25 = arith.constant 0 : index
      %23 = vector.load %arg15[%c0_24, %c0_25] : memref<2x64xf32, #tpu.memory_space<vmem>>, vector<2x64xf32>
      %c0_26 = arith.constant 0 : index
      %c0_27 = arith.constant 0 : index
      %24 = vector.load %arg4[%c0_26, %c0_27] : memref<1x64xf32, #tpu.memory_space<vmem>>, vector<1x64xf32>
      %25 = vector.broadcast %24 : vector<1x64xf32> to vector<2x64xf32>
      %26 = arith.addf %23, %25 : vector<2x64xf32>
      %27 = arith.truncf %22 : vector<2x64xf32> to vector<2x64xbf16>
      %cst_28 = arith.constant dense<0.000000e+00> : vector<2x64xf32>
      %28 = tpu.matmul %27, %17, %cst_28 {dimension_numbers = #tpu.dot_dimension_numbers<[1], [0], [0], [1], [0, 0, 1, 1], [], []>} : vector<2x64xbf16>, vector<64x64xbf16>, vector<2x64xf32> -> vector<2x64xf32>
      %29 = vector.broadcast %18 : vector<1x64xf32> to vector<2x64xf32>
      %30 = arith.addf %28, %29 : vector<2x64xf32>
      %31 = arith.truncf %26 : vector<2x64xf32> to vector<2x64xbf16>
      %cst_29 = arith.constant dense<0.000000e+00> : vector<2x64xf32>
      %32 = tpu.matmul %31, %17, %cst_29 {dimension_numbers = #tpu.dot_dimension_numbers<[1], [0], [0], [1], [0, 0, 1, 1], [], []>} : vector<2x64xbf16>, vector<64x64xbf16>, vector<2x64xf32> -> vector<2x64xf32>
      %33 = vector.broadcast %18 : vector<1x64xf32> to vector<2x64xf32>
      %34 = arith.addf %32, %33 : vector<2x64xf32>
      %cst_30 = arith.constant dense<0.000000e+00> : vector<64xf32>
      %35 = vector.multi_reduction <add>, %30, %cst_30 [0] : vector<2x64xf32> to vector<64xf32>
      %36 = vector.shape_cast %35 : vector<64xf32> to vector<1x64xf32>
      %cst_31 = arith.constant dense<0.000000e+00> : vector<64xf32>
      %37 = vector.multi_reduction <add>, %34, %cst_31 [0] : vector<2x64xf32> to vector<64xf32>
      %38 = vector.shape_cast %37 : vector<64xf32> to vector<1x64xf32>
      %39 = arith.addf %36, %38 : vector<1x64xf32>
      %cst_32 = arith.constant 2.500000e-01 : f32
      %40 = vector.broadcast %cst_32 : f32 to vector<1x64xf32>
      %41 = arith.mulf %39, %40 : vector<1x64xf32>
      %42 = arith.mulf %30, %30 : vector<2x64xf32>
      %cst_33 = arith.constant dense<0.000000e+00> : vector<64xf32>
      %43 = vector.multi_reduction <add>, %42, %cst_33 [0] : vector<2x64xf32> to vector<64xf32>
      %44 = vector.shape_cast %43 : vector<64xf32> to vector<1x64xf32>
      %45 = arith.mulf %34, %34 : vector<2x64xf32>
      %cst_34 = arith.constant dense<0.000000e+00> : vector<64xf32>
      %46 = vector.multi_reduction <add>, %45, %cst_34 [0] : vector<2x64xf32> to vector<64xf32>
      %47 = vector.shape_cast %46 : vector<64xf32> to vector<1x64xf32>
      %48 = arith.addf %44, %47 : vector<1x64xf32>
      %cst_35 = arith.constant 2.500000e-01 : f32
      %49 = vector.broadcast %cst_35 : f32 to vector<1x64xf32>
      %50 = arith.mulf %48, %49 : vector<1x64xf32>
      %51 = arith.mulf %41, %41 : vector<1x64xf32>
      %52 = arith.subf %50, %51 : vector<1x64xf32>
      %cst_36 = arith.constant 9.99999974E-6 : f32
      %53 = vector.broadcast %cst_36 : f32 to vector<1x64xf32>
      %54 = arith.addf %52, %53 : vector<1x64xf32>
      %55 = math.rsqrt %54 : vector<1x64xf32>
      %c0_37 = arith.constant 0 : index
      %c0_38 = arith.constant 0 : index
      %56 = vector.load %arg7[%c0_37, %c0_38] : memref<1x64xf32, #tpu.memory_space<vmem>>, vector<1x64xf32>
      %57 = arith.mulf %55, %56 : vector<1x64xf32>
      %c0_39 = arith.constant 0 : index
      %c0_40 = arith.constant 0 : index
      %58 = vector.load %arg8[%c0_39, %c0_40] : memref<1x64xf32, #tpu.memory_space<vmem>>, vector<1x64xf32>
      %59 = arith.mulf %41, %57 : vector<1x64xf32>
      %60 = arith.subf %58, %59 : vector<1x64xf32>
      %c0_41 = arith.constant 0 : index
      %c0_42 = arith.constant 0 : index
      %61 = vector.load %arg9[%c0_41, %c0_42] : memref<64x128xbf16, #tpu.memory_space<vmem>>, vector<64x128xbf16>
      %c0_43 = arith.constant 0 : index
      %c0_44 = arith.constant 0 : index
      %62 = vector.load %arg10[%c0_43, %c0_44] : memref<1x128xf32, #tpu.memory_space<vmem>>, vector<1x128xf32>
      %c0_45 = arith.constant 0 : index
      %c0_46 = arith.constant 0 : index
      %63 = vector.load %arg11[%c0_45, %c0_46] : memref<128x128xbf16, #tpu.memory_space<vmem>>, vector<128x128xbf16>
      %64 = vector.broadcast %57 : vector<1x64xf32> to vector<2x64xf32>
      %65 = arith.mulf %30, %64 : vector<2x64xf32>
      %66 = vector.broadcast %60 : vector<1x64xf32> to vector<2x64xf32>
      %67 = arith.addf %65, %66 : vector<2x64xf32>
      %cst_47 = arith.constant 0.000000e+00 : f32
      %68 = vector.broadcast %cst_47 : f32 to vector<2x64xf32>
      %69 = arith.maximumf %67, %68 : vector<2x64xf32>
      %70 = arith.truncf %69 : vector<2x64xf32> to vector<2x64xbf16>
      %cst_48 = arith.constant dense<0.000000e+00> : vector<2x128xf32>
      %71 = tpu.matmul %70, %61, %cst_48 {dimension_numbers = #tpu.dot_dimension_numbers<[1], [0], [0], [1], [0, 0, 1, 1], [], []>} : vector<2x64xbf16>, vector<64x128xbf16>, vector<2x128xf32> -> vector<2x128xf32>
      %72 = vector.broadcast %62 : vector<1x128xf32> to vector<2x128xf32>
      %73 = arith.addf %71, %72 : vector<2x128xf32>
      %74 = arith.mulf %73, %73 : vector<2x128xf32>
      %cst_49 = arith.constant dense<0.000000e+00> : vector<2xf32>
      %75 = vector.multi_reduction <add>, %74, %cst_49 [1] : vector<2x128xf32> to vector<2xf32>
      %76 = vector.shape_cast %75 : vector<2xf32> to vector<2x1xf32>
      %cst_50 = arith.constant 1.000000e-24 : f32
      %77 = vector.broadcast %cst_50 : f32 to vector<2x1xf32>
      %78 = arith.maximumf %76, %77 : vector<2x1xf32>
      %79 = math.rsqrt %78 : vector<2x1xf32>
      %80 = vector.broadcast %79 : vector<2x1xf32> to vector<2x128xf32>
      %81 = arith.mulf %73, %80 : vector<2x128xf32>
      %82 = arith.truncf %81 : vector<2x128xf32> to vector<2x128xbf16>
      %cst_51 = arith.constant dense<0.000000e+00> : vector<2x128xf32>
      %83 = tpu.matmul %82, %63, %cst_51 {dimension_numbers = #tpu.dot_dimension_numbers<[1], [0], [0], [1], [0, 0, 1, 1], [], []>} : vector<2x128xbf16>, vector<128x128xbf16>, vector<2x128xf32> -> vector<2x128xf32>
      %84 = vector.broadcast %57 : vector<1x64xf32> to vector<2x64xf32>
      %85 = arith.mulf %34, %84 : vector<2x64xf32>
      %86 = vector.broadcast %60 : vector<1x64xf32> to vector<2x64xf32>
      %87 = arith.addf %85, %86 : vector<2x64xf32>
      %cst_52 = arith.constant 0.000000e+00 : f32
      %88 = vector.broadcast %cst_52 : f32 to vector<2x64xf32>
      %89 = arith.maximumf %87, %88 : vector<2x64xf32>
      %90 = arith.truncf %89 : vector<2x64xf32> to vector<2x64xbf16>
      %cst_53 = arith.constant dense<0.000000e+00> : vector<2x128xf32>
      %91 = tpu.matmul %90, %61, %cst_53 {dimension_numbers = #tpu.dot_dimension_numbers<[1], [0], [0], [1], [0, 0, 1, 1], [], []>} : vector<2x64xbf16>, vector<64x128xbf16>, vector<2x128xf32> -> vector<2x128xf32>
      %92 = vector.broadcast %62 : vector<1x128xf32> to vector<2x128xf32>
      %93 = arith.addf %91, %92 : vector<2x128xf32>
      %94 = arith.mulf %93, %93 : vector<2x128xf32>
      %cst_54 = arith.constant dense<0.000000e+00> : vector<2xf32>
      %95 = vector.multi_reduction <add>, %94, %cst_54 [1] : vector<2x128xf32> to vector<2xf32>
      %96 = vector.shape_cast %95 : vector<2xf32> to vector<2x1xf32>
      %cst_55 = arith.constant 1.000000e-24 : f32
      %97 = vector.broadcast %cst_55 : f32 to vector<2x1xf32>
      %98 = arith.maximumf %96, %97 : vector<2x1xf32>
      %99 = math.rsqrt %98 : vector<2x1xf32>
      %100 = vector.broadcast %99 : vector<2x1xf32> to vector<2x128xf32>
      %101 = arith.mulf %93, %100 : vector<2x128xf32>
      %102 = arith.truncf %101 : vector<2x128xf32> to vector<2x128xbf16>
      %cst_56 = arith.constant dense<0.000000e+00> : vector<2x128xf32>
      %103 = tpu.matmul %102, %63, %cst_56 {dimension_numbers = #tpu.dot_dimension_numbers<[1], [0], [0], [1], [0, 0, 1, 1], [], []>} : vector<2x128xbf16>, vector<128x128xbf16>, vector<2x128xf32> -> vector<2x128xf32>
      %c0_57 = arith.constant 0 : index
      %c0_58 = arith.constant 0 : index
      %c0_59 = arith.constant 0 : index
      %104 = vector.load %arg12[%c0_57, %c0_58, %c0_59] : memref<2x2x128xf32, #tpu.memory_space<vmem>>, vector<1x2x128xf32>
      %105 = vector.shape_cast %104 : vector<1x2x128xf32> to vector<2x128xf32>
      %106 = vector.shape_cast %81 : vector<2x128xf32> to vector<1x2x128xf32>
      tpu.vector_store %arg12[%c0_57, %c0_58, %c0_59], %106 {strides = array<i32>} : memref<2x2x128xf32, #tpu.memory_space<vmem>>, vector<1x2x128xf32>,
      %c1 = arith.constant 1 : index
      %c0_60 = arith.constant 0 : index
      %c0_61 = arith.constant 0 : index
      %107 = vector.load %arg12[%c1, %c0_60, %c0_61] : memref<2x2x128xf32, #tpu.memory_space<vmem>>, vector<1x2x128xf32>
      %108 = vector.shape_cast %107 : vector<1x2x128xf32> to vector<2x128xf32>
      %109 = vector.shape_cast %101 : vector<2x128xf32> to vector<1x2x128xf32>
      tpu.vector_store %arg12[%c1, %c0_60, %c0_61], %109 {strides = array<i32>} : memref<2x2x128xf32, #tpu.memory_space<vmem>>, vector<1x2x128xf32>,
      %c0_62 = arith.constant 0 : index
      %c0_63 = arith.constant 0 : index
      %c0_64 = arith.constant 0 : index
      %110 = vector.load %arg13[%c0_62, %c0_63, %c0_64] : memref<2x2x128xf32, #tpu.memory_space<vmem>>, vector<1x2x128xf32>
      %111 = vector.shape_cast %110 : vector<1x2x128xf32> to vector<2x128xf32>
      %112 = vector.shape_cast %83 : vector<2x128xf32> to vector<1x2x128xf32>
      tpu.vector_store %arg13[%c0_62, %c0_63, %c0_64], %112 {strides = array<i32>} : memref<2x2x128xf32, #tpu.memory_space<vmem>>, vector<1x2x128xf32>,
      %c1_65 = arith.constant 1 : index
      %c0_66 = arith.constant 0 : index
      %c0_67 = arith.constant 0 : index
      %113 = vector.load %arg13[%c1_65, %c0_66, %c0_67] : memref<2x2x128xf32, #tpu.memory_space<vmem>>, vector<1x2x128xf32>
      %114 = vector.shape_cast %113 : vector<1x2x128xf32> to vector<2x128xf32>
      %115 = vector.shape_cast %103 : vector<2x128xf32> to vector<1x2x128xf32>
      tpu.vector_store %arg13[%c1_65, %c0_66, %c0_67], %115 {strides = array<i32>} : memref<2x2x128xf32, #tpu.memory_space<vmem>>, vector<1x2x128xf32>,
    } else {
    }
    return
  }
  func.func @transform_0(%arg0: i32) -> (i32, i32) {
    %c0_i32 = arith.constant 0 : i32
    %c0_i32_0 = arith.constant 0 : i32
    return %c0_i32, %arg0 : i32, i32
  }
  func.func @transform_1(%arg0: i32) -> (i32, i32) {
    %c0_i32 = arith.constant 0 : i32
    %c0_i32_0 = arith.constant 0 : i32
    return %c0_i32, %arg0 : i32, i32
  }
  func.func @transform_2(%arg0: i32) -> (i32, i32) {
    %c0_i32 = arith.constant 0 : i32
    %c0_i32_0 = arith.constant 0 : i32
    return %arg0, %c0_i32 : i32, i32
  }
  func.func @transform_3(%arg0: i32) -> (i32, i32) {
    %c0_i32 = arith.constant 0 : i32
    %c0_i32_0 = arith.constant 0 : i32
    %c0_i32_1 = arith.constant 0 : i32
    return %c0_i32, %c0_i32_0 : i32, i32
  }
  func.func @transform_4(%arg0: i32) -> (i32, i32) {
    %c0_i32 = arith.constant 0 : i32
    %c0_i32_0 = arith.constant 0 : i32
    %c0_i32_1 = arith.constant 0 : i32
    return %c0_i32, %c0_i32_0 : i32, i32
  }
  func.func @transform_5(%arg0: i32) -> (i32, i32) {
    %c0_i32 = arith.constant 0 : i32
    %c0_i32_0 = arith.constant 0 : i32
    %c0_i32_1 = arith.constant 0 : i32
    return %c0_i32, %c0_i32_0 : i32, i32
  }
  func.func @transform_6(%arg0: i32) -> (i32, i32) {
    %c0_i32 = arith.constant 0 : i32
    %c0_i32_0 = arith.constant 0 : i32
    %c0_i32_1 = arith.constant 0 : i32
    return %c0_i32, %c0_i32_0 : i32, i32
  }
  func.func @transform_7(%arg0: i32) -> (i32, i32) {
    %c0_i32 = arith.constant 0 : i32
    %c0_i32_0 = arith.constant 0 : i32
    %c0_i32_1 = arith.constant 0 : i32
    return %c0_i32, %c0_i32_0 : i32, i32
  }
  func.func @transform_8(%arg0: i32) -> (i32, i32) {
    %c0_i32 = arith.constant 0 : i32
    %c0_i32_0 = arith.constant 0 : i32
    %c0_i32_1 = arith.constant 0 : i32
    return %c0_i32, %c0_i32_0 : i32, i32
  }
  func.func @transform_9(%arg0: i32) -> (i32, i32) {
    %c0_i32 = arith.constant 0 : i32
    %c0_i32_0 = arith.constant 0 : i32
    %c0_i32_1 = arith.constant 0 : i32
    return %c0_i32, %c0_i32_0 : i32, i32
  }
  func.func @transform_10(%arg0: i32) -> (i32, i32) {
    %c0_i32 = arith.constant 0 : i32
    %c0_i32_0 = arith.constant 0 : i32
    %c0_i32_1 = arith.constant 0 : i32
    return %c0_i32, %c0_i32_0 : i32, i32
  }
  func.func @transform_11(%arg0: i32) -> (i32, i32, i32) {
    %c0_i32 = arith.constant 0 : i32
    %c0_i32_0 = arith.constant 0 : i32
    %c0_i32_1 = arith.constant 0 : i32
    %c0_i32_2 = arith.constant 0 : i32
    return %c0_i32, %c0_i32_0, %c0_i32_1 : i32, i32, i32
  }
  func.func @transform_12(%arg0: i32) -> (i32, i32, i32) {
    %c0_i32 = arith.constant 0 : i32
    %c0_i32_0 = arith.constant 0 : i32
    %c0_i32_1 = arith.constant 0 : i32
    %c0_i32_2 = arith.constant 0 : i32
    return %c0_i32, %c0_i32_0, %c0_i32_1 : i32, i32, i32
  }
}

</mosaic_0001>

<bundles_post_ra>
// kernel: tpu_custom_call.1
= control target key start
LH: loop header
LB: loop body
LE: loop exit
PB: predicated region body
PF: predicated region fallthrough
CT: control target
= control target key end

     0   :  { %18 = vsyncpa [#allocation5], 0  ;;  %s2378_s0 = inlined_call_operand.vmem [shape: bf16[2,1024], index: 0, kind: input, shape index: {}]   ;;  %s2379_s1 = inlined_call_operand.vmem [shape: bf16[2,1024], index: 1, kind: input, shape index: {}]   ;;  %s2380_s2 = inlined_call_operand.vmem [shape: bf16[1024,64], index: 2, kind: input, shape index: {}]   ;;  %s2381_s3 = inlined_call_operand.vmem [shape: f32[1,64], index: 3, kind: input, shape index: {}]   ;;  %s2382_s4 = inlined_call_operand.vmem [shape: bf16[64,64], index: 4, kind: input, shape index: {}]   ;;  %s2383_s5 = inlined_call_operand.vmem [shape: f32[1,64], index: 5, kind: input, shape index: {}]   ;;  %s2384_s6 = inlined_call_operand.vmem [shape: f32[1,64], index: 6, kind: input, shape index: {}]   ;;  %s2385_s7 = inlined_call_operand.vmem [shape: f32[1,64], index: 7, kind: input, shape index: {}]   ;;  %s2386_s8 = inlined_call_operand.vmem [shape: bf16[64,128], index: 8, kind: input, shape index: {}]   ;;  %s2387_s9 = inlined_call_operand.vmem [shape: f32[1,128], index: 9, kind: input, shape index: {}]   ;;  %s2388_s10 = inlined_call_operand.vmem [shape: bf16[128,128], index: 10, kind: input, shape index: {}]   ;;  %s2389_s11 = inlined_call_operand.hbm [shape: f32[2,2,128], index: 11, kind: output, shape index: {0}]   ;;  %s2390_s12 = inlined_call_operand.hbm [shape: f32[2,2,128], index: 12, kind: output, shape index: {1}]  }
   0x1   :  { %19 = vsyncpa [#allocation7], 0  ;;  %s2026_s21 = smov 0  }
   0x2 LB: > { %s2032_s22 = sadd.s32 4294967295, %s1951_s21   ;;  %p1519_p0 = scmp.ge.s32.totalorder %s1951_s21, 1  ;;  %s1951_s21 = sphi %s2026_s21, %s25_s21  }
   0x3   : > { %p378_p1 = scmp.lt.s32.totalorder %s1951_s21, 3 }
   0x5   : > { %p379_p2 = pnand %p1519_p0, %p378_p1 }
   0x6   : > { %s1520_s23 = sshll.u32 (!%p379_p2), %s2032_s22, 2  ;;  %s1522_s24 = sshll.u32 (!%p379_p2), %s2032_s22, 6 }
   0x7   : > { %382 = sbr.rel (%p379_p2) target bundleno = 1241 (0x4d9), region = 64  ;;  %p424_p3 = scmp.lt.s32.totalorder (!%p379_p2), %s1520_s23, 7 }
   0x8   : > { %p434_p4 = scmp.lt.s32.totalorder (!%p379_p2), %s1522_s24, 127  ;;  %p1524_p5 = scmp.ne.s32.totalorder (!%p379_p2), %s2032_s22, 0 }
   0xe   : > { %s2392_s23 = smov (!%p424_p3, %s1520_s23), 7  ;;  %s2394_s24 = smov (!%p434_p4, %s1522_s24), 127 }
   0xf   : > { %s426_s27 = scalar_lea.vmem %s2378_s0, %s2392_s23  ;;  %s431_s30 = scalar_lea.vmem %s2379_s1, %s2392_s23  ;;  %vm444_vm0 = vcmask (!%p1524_p5), 517120   ;;  %v1953_v0 = vmov (!%p1524_p5), 0.0  }
  0x10   : > { %s1523_s13 = sshll.u32 %s2394_s24, 2  ;;  %443 = sbr.rel (%p1524_p5) target bundleno = 23 (0x17), region = 68  ;;  %445 = vst.msk [vmem:[#allocation2] sm:$0x3] (!%p1524_p5), %vm444_vm0, %v1953_v0  ;;  %446 = vst.msk [vmem:[#allocation3] sm:$0x3] (!%p1524_p5), %vm444_vm0, %v1953_v0 }
  0x11   : > { %s2051_s16 = scalar_lea.vmem %s2380_s2, %s1523_s13 }
  0x17 PF: > { %v2055_v1 = vld [vmem:[%s2051_s16 + $0x40] sm:$0xff]   ;;  %v2070_v5 = vld [vmem:[%s2051_s16 + $0x48] sm:$0xff]   ;;  %v2086_v9 = vld [vmem:[%s2051_s16 + $0x50] sm:$0xff]   ;;  %v525_v31 = vlaneseq  ;;  %v1954_v35 = vmov 1966171168   ;;  %vm815_vm1 = vcmask 517120  }
  0x18   : > { %v2058_v2 = vld [vmem:[%s2051_s16 + $0xc0] sm:$0xff]   ;;  %1589 = vmatprep.subr.bf16.mxu0 %v2055_v1  ;;  %v2074_v6 = vld [vmem:[%s2051_s16 + $0xc8] sm:$0xff]   ;;  %v2090_v10 = vld [vmem:[%s2051_s16 + $0xd0] sm:$0xff]   ;;  %v523_v36 = vunpack.c.l.s4 %v1954_v35  ;;  %p1559_p6 = scmp.ne.s32.totalorder %s2032_s22, 1 }
  0x19   : > { %v2062_v3 = vld [vmem:[%s2051_s16] sm:$0xff]   ;;  %1611 = vmatprep.subr.bf16.mxu1 %v2058_v2  ;;  %v2078_v7 = vld [vmem:[%s2051_s16 + $0x8] sm:$0xff]   ;;  %v2094_v11 = vld [vmem:[%s2051_s16 + $0x10] sm:$0xff]   ;;  %v2163_v37 = vshrl.u32 %v525_v31, 7  ;;  %vm1956_vm2 = vmmov (!%p1559_p6), 0   ;;  %vm985_vm3 = vcmask (!%p1559_p6), 523264  }
  0x1a   : > { %v2066_v4 = vld [vmem:[%s2051_s16 + $0x80] sm:$0xff]   ;;  %1590 = vmatpush3.bf16.msra.mxu0 %v2062_v3  ;;  %v2082_v8 = vld [vmem:[%s2051_s16 + $0x88] sm:$0xff]   ;;  %v2098_v12 = vld [vmem:[%s2051_s16 + $0x90] sm:$0xff]   ;;  %v524_v40 = vunpack.c.0.s8 %v523_v36  ;;  %vm1229_vm4 = vcmask (!%p1559_p6), 1041408  }
  0x1b   : > { %1612 = vmatpush3.bf16.msra.mxu1 %v2066_v4  ;;  %1591 = vmatprep.subr.bf16.mxu0 %v2070_v5  ;;  %v2102_v13 = vld [vmem:[%s2051_s16 + $0x58] sm:$0xff]   ;;  %v2118_v17 = vld [vmem:[%s2051_s16 + $0x60] sm:$0xff]   ;;  %v2134_v21 = vld [vmem:[%s2051_s16 + $0x68] sm:$0xff]  }
  0x1c   : > { %1613 = vmatprep.subr.bf16.mxu1 %v2074_v6  ;;  %v2106_v14 = vld [vmem:[%s2051_s16 + $0xd8] sm:$0xff]   ;;  %v2122_v18 = vld [vmem:[%s2051_s16 + $0xe0] sm:$0xff]   ;;  %v2138_v22 = vld [vmem:[%s2051_s16 + $0xe8] sm:$0xff]   ;;  %v527_v42 = vsub.s32 %v524_v40, %v2163_v37 }
  0x1d   : > { %v2110_v15 = vld [vmem:[%s2051_s16 + $0x18] sm:$0xff]   ;;  %v2126_v19 = vld [vmem:[%s2051_s16 + $0x20] sm:$0xff]   ;;  %v2142_v23 = vld [vmem:[%s2051_s16 + $0x28] sm:$0xff]  }
  0x1e   : > { %1592 = vmatpush3.bf16.msra.mxu0 %v2078_v7  ;;  %v2114_v16 = vld [vmem:[%s2051_s16 + $0x98] sm:$0xff]   ;;  %v2130_v20 = vld [vmem:[%s2051_s16 + $0xa0] sm:$0xff]   ;;  %v2146_v24 = vld [vmem:[%s2051_s16 + $0xa8] sm:$0xff]  }
  0x1f   : > { %1614 = vmatpush3.bf16.msra.mxu1 %v2082_v8  ;;  %1593 = vmatprep.subr.bf16.mxu0 %v2086_v9  ;;  %v1855_v25 = vld [vmem:[%s2051_s16 + $0x70] sm:$0xff]   ;;  %v1859_v29 = vld [vmem:[%s2051_s16 + $0x78] sm:$0xff]   ;;  %v1525_v34 = vld.sshfl [vmem:[%s426_s27] sm:$0x33 pattern:$0x75316420] }
  0x20   : > { %1615 = vmatprep.subr.bf16.mxu1 %v2090_v10  ;;  %v1856_v26 = vld [vmem:[%s2051_s16 + $0xf0] sm:$0xff]   ;;  %v1860_v30 = vld [vmem:[%s2051_s16 + $0xf8] sm:$0xff]   ;;  %v1558_v38 = vld.sshfl [vmem:[%s431_s30] sm:$0x33 pattern:$0x75316420]  ;;  %v521_v39 = vcombine.high %v1525_v34, %v1525_v34  ;;  %v528_v44 = vrot.slane %v1525_v34, %v527_v42 }
  0x21   : > { %v1857_v27 = vld [vmem:[%s2051_s16 + $0x30] sm:$0xff]   ;;  %v1861_v32 = vld [vmem:[%s2051_s16 + $0x38] sm:$0xff]   ;;  %v827_v41 = vcombine.high %v1558_v38, %v1558_v38  ;;  %v834_v49 = vrot.slane %v1558_v38, %v527_v42  ;;  %v511_v60 = vld [vmem:[#allocation2] sm:$0x3] }
  0x22   : > { %1594 = vmatpush3.bf16.msra.mxu0 %v2094_v11  ;;  %v1858_v28 = vld [vmem:[%s2051_s16 + $0xb0] sm:$0xff]   ;;  %v1862_v33 = vld [vmem:[%s2051_s16 + $0xb8] sm:$0xff]   ;;  %v535_v43 = vrot.slane %v521_v39, %v527_v42  ;;  %v536_v47 = vcombine.high %v528_v44, %v528_v44 }
  0x23   : > { %1616 = vmatpush3.bf16.msra.mxu1 %v2098_v12  ;;  %1595 = vmatprep.subr.bf16.mxu0 %v2102_v13  ;;  %v841_v45 = vrot.slane %v827_v41, %v527_v42  ;;  %v842_v50 = vcombine.high %v834_v49, %v834_v49 }
  0x24   : > { %1617 = vmatprep.subr.bf16.mxu1 %v2106_v14  ;;  %766 = vmatprep.mubr.bf16.mxu0 %v535_v43  ;;  %v537_v46 = vcombine.high %v535_v43, %v535_v43 }
  0x25   : > { %v843_v48 = vcombine.high %v841_v45, %v841_v45 }
  0x26   : > { %1596 = vmatpush3.bf16.msra.mxu0 %v2110_v15  ;;  %806 = vmatprep.mubr.bf16.mxu1 %v537_v46 }
  0x27   : > { %1618 = vmatpush3.bf16.msra.mxu1 %v2114_v16  ;;  %1597 = vmatprep.subr.bf16.mxu0 %v2118_v17 }
  0x28   : > { %1619 = vmatprep.subr.bf16.mxu1 %v2122_v18 }
  0x2a   : > { %1598 = vmatpush3.bf16.msra.mxu0 %v2126_v19 }
  0x2b   : > { %1620 = vmatpush3.bf16.msra.mxu1 %v2130_v20  ;;  %1599 = vmatprep.subr.bf16.mxu0 %v2134_v21 }
  0x2c   : > { %1621 = vmatprep.subr.bf16.mxu1 %v2138_v22 }
  0x2e   : > { %1600 = vmatpush3.bf16.msra.mxu0 %v2142_v23 }
  0x2f   : > { %1622 = vmatpush3.bf16.msra.mxu1 %v2146_v24  ;;  %1601 = vmatprep.subr.bf16.mxu0 %v1855_v25 }
  0x30   : > { %1623 = vmatprep.subr.bf16.mxu1 %v1856_v26 }
  0x32   : > { %1602 = vmatpush3.bf16.msra.mxu0 %v1857_v27 }
  0x33   : > { %1624 = vmatpush3.bf16.msra.mxu1 %v1858_v28  ;;  %1603 = vmatprep.subr.bf16.mxu0 %v1859_v29 }
  0x34   : > { %1625 = vmatprep.subr.bf16.mxu1 %v1860_v30 }
  0x36   : > { %1604 = vmatpush3.bf16.msra.mxu0 %v1861_v32 }
  0x37   : > { %1626 = vmatpush3.bf16.msra.mxu1 %v1862_v33  ;;  %1633 = vmatprep.subr.bf16.mxu0 %v2055_v1 }
  0x38   : > { %1655 = vmatprep.subr.bf16.mxu1 %v2058_v2 }
  0x39   : > { %767 = vmatmul.mubr.bf16.vlgmr.msra.gmra.mrb[0].mxu0 %v528_v44 }
  0x3a   : > { %1634 = vmatpush3.bf16.msra.mxu0 %v2062_v3  ;;  %807 = vmatmul.mubr.bf16.vlgmr.msra.gmra.mrb[0].mxu1 %v536_v47 }
  0x3b   : > { %1635 = vmatprep.subr.bf16.mxu0 %v2070_v5  ;;  %1656 = vmatpush3.bf16.msra.mxu1 %v2066_v4 }
  0x3c   : > { %880 = vmatprep.mubr.bf16.mxu0 %v841_v45  ;;  %1657 = vmatprep.subr.bf16.mxu1 %v2074_v6 }
  0x3d   : > { %920 = vmatprep.mubr.bf16.mxu1 %v843_v48 }
  0x3e   : > { %1636 = vmatpush3.bf16.msra.mxu0 %v2078_v7 }
  0x3f   : > { %1637 = vmatprep.subr.bf16.mxu0 %v2086_v9  ;;  %1658 = vmatpush3.bf16.msra.mxu1 %v2082_v8  ;;  %v817_v9 = vld [vmem:[#allocation3] sm:$0x3] }
  0x40   : > { %1659 = vmatprep.subr.bf16.mxu1 %v2090_v10 }
  0x42   : > { %1638 = vmatpush3.bf16.msra.mxu0 %v2094_v11 }
  0x43   : > { %1639 = vmatprep.subr.bf16.mxu0 %v2102_v13  ;;  %1660 = vmatpush3.bf16.msra.mxu1 %v2098_v12  ;;  %v1863_v13 = vld [vmem:[%s2382_s4] sm:$0xff] (!%p1559_p6)  }
  0x44   : > { %1661 = vmatprep.subr.bf16.mxu1 %v2106_v14  ;;  %v1955_v14 = vmov (!%p1559_p6), 0.0  }
  0x46   : > { %1640 = vmatpush3.bf16.msra.mxu0 %v2110_v15  ;;  %v1864_v15 = vld [vmem:[%s2382_s4 + $0x8] sm:$0xff] (!%p1559_p6)  }
  0x47   : > { %1641 = vmatprep.subr.bf16.mxu0 %v2118_v17  ;;  %1662 = vmatpush3.bf16.msra.mxu1 %v2114_v16  ;;  %v1865_v16 = vld [vmem:[%s2382_s4 + $0x10] sm:$0xff] (!%p1559_p6)  }
  0x48   : > { %1663 = vmatprep.subr.bf16.mxu1 %v2122_v18  ;;  %v1560_v18 = vld [vmem:[%s2381_s3] ss:$0 sm:$0xff] (!%p1559_p6) }
  0x4a   : > { %1642 = vmatpush3.bf16.msra.mxu0 %v2126_v19  ;;  %v1866_v19 = vld [vmem:[%s2382_s4 + $0x18] sm:$0xff] (!%p1559_p6)  }
  0x4b   : > { %1643 = vmatprep.subr.bf16.mxu0 %v2134_v21  ;;  %1664 = vmatpush3.bf16.msra.mxu1 %v2130_v20 }
  0x4c   : > { %1665 = vmatprep.subr.bf16.mxu1 %v2138_v22 }
  0x4e   : > { %1644 = vmatpush3.bf16.msra.mxu0 %v2142_v23 }
  0x4f   : > { %1645 = vmatprep.subr.bf16.mxu0 %v1855_v25  ;;  %1666 = vmatpush3.bf16.msra.mxu1 %v2146_v24  ;;  %v2236_v25 = vld [vmem:[%s2386_s8] sm:$0xff] (!%p1559_p6)  }
  0x50   : > { %1667 = vmatprep.subr.bf16.mxu1 %v1856_v26  ;;  %v2243_v26 = vld [vmem:[%s2386_s8 + $0x8] sm:$0xff] (!%p1559_p6)  }
  0x52   : > { %1646 = vmatpush3.bf16.msra.mxu0 %v1857_v27  ;;  %v2250_v27 = vld [vmem:[%s2386_s8 + $0x10] sm:$0xff] (!%p1559_p6)  }
  0x53   : > { %1647 = vmatprep.subr.bf16.mxu0 %v1859_v29  ;;  %1668 = vmatpush3.bf16.msra.mxu1 %v1858_v28  ;;  %v2257_v28 = vld [vmem:[%s2386_s8 + $0x18] sm:$0xff] (!%p1559_p6)   ;;  %v1561_v29 = vld [vmem:[%s2383_s5] ss:$0 sm:$0xff] (!%p1559_p6) }
  0x54   : > { %1669 = vmatprep.subr.bf16.mxu1 %v1860_v30 }
  0x56   : > { %1648 = vmatpush3.bf16.msra.mxu0 %v1861_v32 }
  0x57   : > { %1670 = vmatpush3.bf16.msra.mxu1 %v1862_v33  ;;  %1739 = vmatprep.subr.bf16.mxu0 (!%p1559_p6), %v1955_v14 }
  0x58   : > { %1715 = vmatprep.subr.bf16.mxu1 (!%p1559_p6), %v1955_v14 }
  0x59   : > { %881 = vmatmul.mubr.bf16.vlgmr.msra.gmra.mrb[4].mxu0 %v834_v49 }
  0x5a   : > { %921 = vmatmul.mubr.bf16.vlgmr.msra.gmra.mrb[4].mxu1 %v842_v50  ;;  %1747 = vmatprep.mubr.msk.bf16.mxu0 (!%p1559_p6), %vm1956_vm2, %v1955_v14 }
  0x5b   : > { %1716 = vmatpush3.bf16.msra.mxu1 (!%p1559_p6), %v1863_v13  ;;  %1723 = vmatprep.mubr.msk.bf16.mxu1 (!%p1559_p6), %vm1956_vm2, %v1955_v14 }
  0x5c   : > { %1717 = vmatprep.subr.bf16.mxu1 (!%p1559_p6), %v1955_v14  ;;  %1740 = vmatpush3.bf16.msra.mxu0 (!%p1559_p6), %v2236_v25 }
  0x5d   : > { %1741 = vmatprep.subr.bf16.mxu0 (!%p1559_p6), %v1955_v14 }
  0x5f   : > { %1718 = vmatpush3.bf16.msra.mxu1 (!%p1559_p6), %v1864_v15 }
  0x60   : > { %1719 = vmatprep.subr.bf16.mxu1 (!%p1559_p6), %v1955_v14  ;;  %1742 = vmatpush3.bf16.msra.mxu0 (!%p1559_p6), %v2243_v26 }
  0x61   : > { %1743 = vmatprep.subr.bf16.mxu0 (!%p1559_p6), %v1955_v14 }
  0x63   : > { %1720 = vmatpush3.bf16.msra.mxu1 (!%p1559_p6), %v1865_v16 }
  0x64   : > { %1721 = vmatprep.subr.bf16.mxu1 (!%p1559_p6), %v1955_v14  ;;  %1744 = vmatpush3.bf16.msra.mxu0 (!%p1559_p6), %v2250_v27 }
  0x65   : > { %1745 = vmatprep.subr.bf16.mxu0 (!%p1559_p6), %v1955_v14 }
  0x67   : > { %1722 = vmatpush3.bf16.msra.mxu1 (!%p1559_p6), %v1866_v19 }
  0x68   : > { %1727 = vmatprep.subr.bf16.mxu1 (!%p1559_p6), %v1955_v14  ;;  %1746 = vmatpush3.bf16.msra.mxu0 (!%p1559_p6), %v2257_v28 }
  0x69   : > { %1771 = vmatprep.subr.bf16.mxu0 (!%p1559_p6), %v1955_v14 }
 0x10c   : > { %v1605_v51 = vpop.f32.mrb[0].mxu0 }
 0x10d   : > { %v1606_v52 = vpop.f32.mrb[1].mxu0  ;;  %v1627_v53 = vpop.f32.mrb[0].mxu1 }
 0x10e   : > { %v1607_v54 = vadd.f32 %v1606_v52, %v1605_v51  ;;  %v1608_v55 = vpop.f32.mrb[2].mxu0  ;;  %v1628_v56 = vpop.f32.mrb[1].mxu1 }
 0x10f   : > { %v1609_v57 = vpop.f32.mrb[3].mxu0  ;;  %v1629_v58 = vadd.f32 %v1628_v56, %v1627_v53  ;;  %v1630_v59 = vpop.f32.mrb[2].mxu1 }
 0x110   : > { %v1631_v61 = vpop.f32.mrb[3].mxu1 }
 0x111   : > { %v809_v62 = vadd.f32 %v1629_v58, %v1607_v54 }
 0x113   : > { %v814_v63 = vadd.f32 %v809_v62, %v511_v60 }
 0x115   : > { %816 = vst.msk [vmem:[#allocation2] sm:$0x3] %vm815_vm1, %v814_v63 }
 0x11c   : > { %v943_v17 = vld [vmem:[#allocation2] sm:$0x3] (!%p1559_p6) }
 0x11d   : > { %v951_v20 = vadd.f32 (!%p1559_p6), %v1560_v18, %v943_v17 }
 0x11f   : > { %v954_v21 = vpack.c.bf16 (!%p1559_p6), %v951_v20, %v951_v20 }
 0x121   : > { %1724 = vmatmul.mubr.msk.bf16.vlgmr.msra.gmra.mrb[0].mxu1 (!%p1559_p6), %vm985_vm3, %v954_v21 }
 0x122   : > { %1728 = vmatpush3.bf16.msra.mxu1 (!%p1559_p6), %v1863_v13  ;;  %1735 = vmatprep.mubr.msk.bf16.mxu1 (!%p1559_p6), %vm1956_vm2, %v1955_v14 }
 0x123   : > { %1729 = vmatprep.subr.bf16.mxu1 (!%p1559_p6), %v1955_v14 }
 0x126   : > { %1730 = vmatpush3.bf16.msra.mxu1 (!%p1559_p6), %v1864_v15  ;;  %v1111_v15 = vld [vmem:[%s2384_s6] sm:$0x1] (!%p1559_p6) }
 0x127   : > { %1731 = vmatprep.subr.bf16.mxu1 (!%p1559_p6), %v1955_v14 }
 0x12a   : > { %1732 = vmatpush3.bf16.msra.mxu1 (!%p1559_p6), %v1865_v16  ;;  %v1143_v16 = vsub.s32 (!%p1559_p6), 0, %v2163_v37 }
 0x12b   : > { %1733 = vmatprep.subr.bf16.mxu1 (!%p1559_p6), %v1955_v14 }
 0x12c   : > { %v1649_v0 = vpop.f32.mrb[4].mxu0 }
 0x12d   : > { %v1650_v1 = vpop.f32.mrb[5].mxu0  ;;  %v1671_v2 = vpop.f32.mrb[4].mxu1 }
 0x12e   : > { %v1651_v3 = vadd.f32 %v1650_v1, %v1649_v0  ;;  %v1652_v4 = vpop.f32.mrb[6].mxu0  ;;  %v1672_v5 = vpop.f32.mrb[5].mxu1  ;;  %1734 = vmatpush3.bf16.msra.mxu1 (!%p1559_p6), %v1866_v19  ;;  %v1113_v19 = vld [vmem:[%s2385_s7] sm:$0x1] (!%p1559_p6) }
 0x12f   : > { %v1653_v6 = vpop.f32.mrb[7].mxu0  ;;  %v1673_v7 = vadd.f32 %v1672_v5, %v1671_v2  ;;  %v1674_v8 = vpop.f32.mrb[6].mxu1  ;;  %933 = sbr.rel (%p1559_p6) target bundleno = 1190 (0x4a6), region = 72  ;;  %1751 = vmatprep.subr.bf16.mxu1 (!%p1559_p6), %v1955_v14 }
 0x130   : > { %v1675_v10 = vpop.f32.mrb[7].mxu1 }
 0x131   : > { %v923_v11 = vadd.f32 %v1673_v7, %v1651_v3 }
 0x133   : > { %v928_v12 = vadd.f32 %v923_v11, %v817_v9 }
 0x135   : > { %929 = vst.msk [vmem:[#allocation3] sm:$0x3] %vm815_vm1, %v928_v12 }
 0x13c   : > { %v952_v22 = vld [vmem:[#allocation3] sm:$0x3] }
 0x13d   : > { %v953_v23 = vadd.f32 %v1560_v18, %v952_v22 }
 0x13f   : > { %v1029_v24 = vpack.c.bf16 %v953_v23, %v953_v23 }
 0x141   : > { %1736 = vmatmul.mubr.msk.bf16.vlgmr.msra.gmra.mrb[4].mxu1 %vm985_vm3, %v1029_v24 }
 0x142   : > { %1767 = vmatprep.mubr.msk.bf16.mxu1 %vm1956_vm2, %v1955_v14 }
 0x1f4   : > { %v1023_v30 = vpop.f32.mrb[0].mxu1 }
 0x1f5   : > { %v1024_v31 = vadd.f32 %v1561_v29, %v1023_v30  ;;  %v1725_v32 = vpop.f32.mrb[1].mxu1 }
 0x1f6   : > { %v1026_v33 = vpop.f32.mrb[2].mxu1 }
 0x1f7   : > { %v1726_v34 = vpop.f32.mrb[3].mxu1  ;;  %v1089_v35 = vmul.f32 %v1024_v31, %v1024_v31  ;;  %v1073_v36 = vsel %vm815_vm1, %v1024_v31, 0.0 }
 0x1f8   : > { %v1074_v39 = vrot.slane %v1073_v36, 4 }
 0x1f9   : > { %v1090_v38 = vsel %vm815_vm1, %v1089_v35, 0.0  ;;  %v1568_v35 = vld [vmem:[%s2387_s9] ss:$0 sm:$0xff] }
 0x1fa   : > { %v1091_v40 = vrot.slane %v1090_v38, 4  ;;  %v1075_v41 = vadd.f32 %v1074_v39, %v1073_v36 }
 0x1fc   : > { %v1092_v42 = vadd.f32 %v1091_v40, %v1090_v38  ;;  %v1076_v46 = vrot.slane %v1075_v41, 2 }
 0x1fe   : > { %v1093_v51 = vrot.slane %v1092_v42, 2  ;;  %v1077_v54 = vadd.f32 %v1076_v46, %v1075_v41 }
 0x200   : > { %v1094_v57 = vadd.f32 %v1093_v51, %v1092_v42  ;;  %v1078_v60 = vrot.slane %v1077_v54, 1  ;;  %v1875_v51 = vld [vmem:[%s2388_s10 + $0x20] sm:$0xff]  }
 0x202   : > { %v1095_v63 = vrot.slane %v1094_v57, 1  ;;  %v1079_v2 = vadd.f32 %v1078_v60, %v1077_v54  ;;  %v1878_v54 = vld [vmem:[%s2388_s10 + $0x38] sm:$0xff]  }
 0x204   : > { %v1096_v5 = vadd.f32 %v1095_v63, %v1094_v57 }
 0x214   : > { %v1067_v43 = vpop.f32.mrb[4].mxu1 }
 0x215   : > { %v1068_v44 = vadd.f32 %v1561_v29, %v1067_v43  ;;  %v1737_v45 = vpop.f32.mrb[5].mxu1 }
 0x216   : > { %v1070_v47 = vpop.f32.mrb[6].mxu1 }
 0x217   : > { %v1080_v48 = vsel %vm815_vm1, %v1068_v44, 0.0  ;;  %v1097_v49 = vmul.f32 %v1068_v44, %v1068_v44  ;;  %v1738_v50 = vpop.f32.mrb[7].mxu1 }
 0x218   : > { %v1081_v52 = vrot.slane %v1080_v48, 4 }
 0x219   : > { %v1098_v53 = vsel %vm815_vm1, %v1097_v49, 0.0 }
 0x21a   : > { %v1082_v55 = vadd.f32 %v1081_v52, %v1080_v48  ;;  %v1099_v56 = vrot.slane %v1098_v53, 4  ;;  %v1876_v52 = vld [vmem:[%s2388_s10 + $0x28] sm:$0xff]  }
 0x21c   : > { %v1083_v58 = vrot.slane %v1082_v55, 2  ;;  %v1100_v59 = vadd.f32 %v1099_v56, %v1098_v53  ;;  %v1877_v53 = vld [vmem:[%s2388_s10 + $0x30] sm:$0xff]  }
 0x21e   : > { %v1084_v61 = vadd.f32 %v1083_v58, %v1082_v55  ;;  %v1101_v62 = vrot.slane %v1100_v59, 2 }
 0x220   : > { %v1085_v0 = vrot.slane %v1084_v61, 1  ;;  %v1102_v1 = vadd.f32 %v1101_v62, %v1100_v59 }
 0x222   : > { %v1086_v3 = vadd.f32 %v1085_v0, %v1084_v61  ;;  %v1103_v4 = vrot.slane %v1102_v1, 1 }
 0x224   : > { %v1087_v6 = vadd.f32 %v1086_v3, %v1079_v2  ;;  %v1104_v7 = vadd.f32 %v1103_v4, %v1102_v1 }
 0x226   : > { %v1088_v8 = vmul.f32 0.25, %v1087_v6  ;;  %v1105_v9 = vadd.f32 %v1104_v7, %v1096_v5 }
 0x228   : > { %v1106_v10 = vmul.f32 0.25, %v1105_v9  ;;  %v1107_v11 = vmul.f32 %v1088_v8, %v1088_v8 }
 0x22a   : > { %v1108_v12 = vsub.f32 %v1106_v10, %v1107_v11 }
 0x22c   : > { %v1109_v13 = vadd.f32 1e-05, %v1108_v12 }
 0x22e   : > { %1879 = vrsqrt.f32 %v1109_v13 }
 0x238   : > { %v1880_v17 = vpop.eup %1879 }
 0x239   : > { %v1112_v18 = vmul.f32 %v1880_v17, %v1111_v15 }
 0x23b   : > { %v1114_v20 = vmul.f32 %v1112_v18, %v1088_v8  ;;  %v1144_v21 = vrot.slane %v1112_v18, %v1143_v16 }
 0x23d   : > { %v1115_v22 = vsub.f32 %v1113_v19, %v1114_v20  ;;  %v1145_v23 = vmul.f32 %v1144_v21, %v1024_v31  ;;  %v1325_v24 = vmul.f32 %v1144_v21, %v1068_v44 }
 0x23f   : > { %v1150_v29 = vrot.slane %v1115_v22, %v1143_v16 }
 0x241   : > { %v1326_v30 = vadd.f32 %v1325_v24, %v1150_v29  ;;  %v1152_v32 = vadd.f32 %v1150_v29, %v1145_v23 }
 0x243   : > { %v1153_v33 = vmax.f32 %v1152_v32, 0.0  ;;  %v1327_v37 = vmax.f32 %v1326_v30, 0.0 }
 0x245   : > { %v1154_v34 = vpack.c.bf16 %v1153_v33, %v1153_v33  ;;  %v1328_v31 = vpack.c.bf16 %v1327_v37, %v1327_v37 }
 0x247   : > { %1748 = vmatmul.mubr.msk.bf16.vlgmr.msra.gmra.mrb[0].mxu0 %vm985_vm3, %v1154_v34 }
 0x248   : > { %1772 = vmatpush3.bf16.msra.mxu0 %v2236_v25  ;;  %1779 = vmatprep.mubr.msk.bf16.mxu0 %vm1956_vm2, %v1955_v14  ;;  %v1871_v25 = vld [vmem:[%s2388_s10] sm:$0xff]  }
 0x249   : > { %1773 = vmatprep.subr.bf16.mxu0 %v1955_v14  ;;  %1752 = vmatpush3.bf16.msra.mxu1 %v1871_v25 }
 0x24a   : > { %1753 = vmatprep.subr.bf16.mxu1 %v1955_v14 }
 0x24c   : > { %1774 = vmatpush3.bf16.msra.mxu0 %v2243_v26  ;;  %v1872_v26 = vld [vmem:[%s2388_s10 + $0x8] sm:$0xff]  }
 0x24d   : > { %1775 = vmatprep.subr.bf16.mxu0 %v1955_v14  ;;  %1754 = vmatpush3.bf16.msra.mxu1 %v1872_v26 }
 0x24e   : > { %1755 = vmatprep.subr.bf16.mxu1 %v1955_v14 }
 0x250   : > { %1776 = vmatpush3.bf16.msra.mxu0 %v2250_v27  ;;  %v1873_v27 = vld [vmem:[%s2388_s10 + $0x10] sm:$0xff]  }
 0x251   : > { %1777 = vmatprep.subr.bf16.mxu0 %v1955_v14  ;;  %1756 = vmatpush3.bf16.msra.mxu1 %v1873_v27 }
 0x252   : > { %1757 = vmatprep.subr.bf16.mxu1 %v1955_v14 }
 0x254   : > { %1778 = vmatpush3.bf16.msra.mxu0 %v2257_v28  ;;  %v1874_v28 = vld [vmem:[%s2388_s10 + $0x18] sm:$0xff]  }
 0x255   : > { %1783 = vmatprep.subr.bf16.mxu0 %v1955_v14  ;;  %1758 = vmatpush3.bf16.msra.mxu1 %v1874_v28 }
 0x256   : > { %1759 = vmatprep.subr.bf16.mxu1 %v1955_v14 }
 0x257   : > { %1780 = vmatmul.mubr.msk.bf16.vlgmr.msra.gmra.mrb[4].mxu0 %vm985_vm3, %v1328_v31 }
 0x258   : > { %1799 = vmatprep.mubr.msk.bf16.mxu0 %vm1956_vm2, %v1955_v14  ;;  %1784 = vmatpush3.bf16.msra.mxu0 %v1871_v25 }
 0x259   : > { %1785 = vmatprep.subr.bf16.mxu0 %v1955_v14  ;;  %1760 = vmatpush3.bf16.msra.mxu1 %v1875_v51 }
 0x25a   : > { %1761 = vmatprep.subr.bf16.mxu1 %v1955_v14 }
 0x25c   : > { %1786 = vmatpush3.bf16.msra.mxu0 %v1872_v26 }
 0x25d   : > { %1787 = vmatprep.subr.bf16.mxu0 %v1955_v14  ;;  %1762 = vmatpush3.bf16.msra.mxu1 %v1876_v52 }
 0x25e   : > { %1763 = vmatprep.subr.bf16.mxu1 %v1955_v14 }
 0x260   : > { %1788 = vmatpush3.bf16.msra.mxu0 %v1873_v27 }
 0x261   : > { %1789 = vmatprep.subr.bf16.mxu0 %v1955_v14  ;;  %1764 = vmatpush3.bf16.msra.mxu1 %v1877_v53 }
 0x262   : > { %1765 = vmatprep.subr.bf16.mxu1 %v1955_v14 }
 0x264   : > { %1790 = vmatpush3.bf16.msra.mxu0 %v1874_v28 }
 0x265   : > { %1791 = vmatprep.subr.bf16.mxu0 %v1955_v14  ;;  %1766 = vmatpush3.bf16.msra.mxu1 %v1878_v54 }
 0x268   : > { %1792 = vmatpush3.bf16.msra.mxu0 %v1875_v51 }
 0x269   : > { %1793 = vmatprep.subr.bf16.mxu0 %v1955_v14 }
 0x26c   : > { %1794 = vmatpush3.bf16.msra.mxu0 %v1876_v52 }
 0x26d   : > { %1795 = vmatprep.subr.bf16.mxu0 %v1955_v14 }
 0x270   : > { %1796 = vmatpush3.bf16.msra.mxu0 %v1877_v53 }
 0x271   : > { %1797 = vmatprep.subr.bf16.mxu0 %v1955_v14 }
 0x274   : > { %1798 = vmatpush3.bf16.msra.mxu0 %v1878_v54 }
 0x31a   : > { %v1222_v36 = vpop.f32.mrb[0].mxu0 }
 0x31b   : > { %v1223_v38 = vadd.f32 %v1568_v35, %v1222_v36  ;;  %v1749_v39 = vpop.f32.mrb[1].mxu0 }
 0x31c   : > { %v1225_v40 = vpop.f32.mrb[2].mxu0 }
 0x31d   : > { %v1750_v41 = vpop.f32.mrb[3].mxu0  ;;  %v1228_v42 = vmul.f32 %v1223_v38, %v1223_v38 }
 0x31f   : > { %v1230_v43 = vsel %vm1229_vm4, %v1228_v42, 0.0 }
 0x320   : > { %1231 = vadd.xlane.f32.xlu0 %v1230_v43 }
 0x32a   : > { %v1366_v44 = vpop.f32.mrb[4].mxu0 }
 0x32b   : > { %v1367_v45 = vadd.f32 %v1568_v35, %v1366_v44  ;;  %v1781_v46 = vpop.f32.mrb[5].mxu0 }
 0x32c   : > { %v1369_v47 = vpop.f32.mrb[6].mxu0 }
 0x32d   : > { %v1782_v48 = vpop.f32.mrb[7].mxu0  ;;  %v1372_v49 = vmul.f32 %v1367_v45, %v1367_v45 }
 0x32f   : > { %v1373_v50 = vsel %vm1229_vm4, %v1372_v49, 0.0 }
 0x330   : > { %1374 = vadd.xlane.f32.xlu0 %v1373_v50 }
 0x3ad   : > { %v1232_v55 = vpop.xlane.xlu0 %1231 }
 0x3ae   : > { %v1233_v56 = vmax.f32 %v1232_v55, 1e-24 }
 0x3b0   : > { %1881 = vrsqrt.f32 %v1233_v56 }
 0x3ba   : > { %v1882_v57 = vpop.eup %1881 }
 0x3bb   : > { %v1235_v58 = vmul.f32 %v1882_v57, %v1223_v38 }
 0x3bd   : > { %v1375_v59 = vpop.xlane.xlu0 %1374  ;;  %v1236_v60 = vpack.c.bf16 %v1235_v58, %v1235_v58  ;;  %1420 = vst [vmem:[#allocation4] sm:$0x3] %v1235_v58 }
 0x3be   : > { %v1376_v61 = vmax.f32 %v1375_v59, 1e-24 }
 0x3bf   : > { %1768 = vmatmul.mubr.bf16.vlgmr.msra.gmra.mrb[8].mxu1 %v1236_v60 }
 0x3c0   : > { %1883 = vrsqrt.f32 %v1376_v61 }
 0x3ca   : > { %v1884_v62 = vpop.eup %1883 }
 0x3cb   : > { %v1378_v63 = vmul.f32 %v1884_v62, %v1367_v45 }
 0x3cd   : > { %v1379_v0 = vpack.c.bf16 %v1378_v63, %v1378_v63  ;;  %1422 = vst [vmem:[#allocation4 + $0x2] sm:$0x3] %v1378_v63 }
 0x3cf   : > { %1800 = vmatmul.mubr.bf16.vlgmr.msra.gmra.mrb[8].mxu0 %v1379_v0 }
 0x492   : > { %v1319_v1 = vpop.f32.mrb[8].mxu1 }
 0x493   : > { %1423 = vst [vmem:[#allocation6] sm:$0x3] %v1319_v1  ;;  %v1769_v14 = vpop.f32.mrb[9].mxu1 }
 0x494   : > { %v1322_v2 = vpop.f32.mrb[10].mxu1 }
 0x495   : > { %v1770_v3 = vpop.f32.mrb[11].mxu1 }
 0x4a2   : > { %v1414_v4 = vpop.f32.mrb[8].mxu0 }
 0x4a3   : > { %1425 = vst [vmem:[#allocation6 + $0x2] sm:$0x3] %v1414_v4  ;;  %v1801_v5 = vpop.f32.mrb[9].mxu0 }
 0x4a4   : > { %v1417_v6 = vpop.f32.mrb[10].mxu0 }
 0x4a5   : > { %v1802_v7 = vpop.f32.mrb[11].mxu0 }
 0x4a6 PF: > { %p1811_p7 = scmp.eq.s32.totalorder %s2032_s22, 1  ;;  %s1957_s15 = smov [#allocation4]  }
 0x4a7   : > { %s1432_s16 = sshll.u32 %s1957_s15, 4  ;;  %s1433_s16 = int_to_ptr.vmem [resolvable:$true] %s1432_s16 }
 0x4a8   : > { %s1885_s17 = scalar_lea.vmem %s1433_s16, 64  ;;  %p1892_p11 = scmp.lt.s32.totalorder %s1433_s16, %s1433_s16 }
 0x4a9   : > { %p1886_p8 = scmp.ne.s32.totalorder %s1433_s16, %s1885_s17  ;;  %p1893_p12 = scmp.lt.s32.totalorder %s1885_s17, %s1885_s17 }
 0x4ab   : > { %p1887_p9 = pnand %p1886_p8, %p1811_p7  ;;  %p1894_p13 = por %p1893_p12, %p1892_p11 }
 0x4ad   : > { %p1888_p10 = pneg %p1887_p9 }
 0x4af   : > { %p1895_p0 = pnand %p1894_p13, %p1888_p10 }
 0x4b1   : > { %1898 = shalt.err (!%p1895_p0)
}
 0x4b2   : > { %s1899_s20 = scalar_lea.hbm %s2389_s11, 64 }
 0x4b3   : > { %p1900_p1 = scmp.ne.s32.totalorder %s2389_s11, %s1899_s20  ;;  %p1905_p4 = scmp.lt.u32.totalorder %s1899_s20, %s2389_s11 }
 0x4b5   : > { %p1901_p2 = pnand %p1900_p1, %p1811_p7 }
 0x4b7   : > { %p1902_p3 = pneg %p1901_p2 }
 0x4b9   : > { %p1907_p5 = pnand %p1905_p4, %p1902_p3 }
 0x4bb   : > { %1910 = shalt.err (!%p1907_p5)
}
 0x4bc   : > { %s1958_s27 = smov 32   ;;  %s1959_s28 = smov 2  }
 0x4bd   : > { %1804 = dma.vmem_to_hbm [thread:$0]  (%p1811_p7), %s1433_s16, 64, %s2389_s11, [#allocation5], %s1958_s27, %s1958_s27, %s1959_s28  }
 0x4be   : > { %s1960_s13 = smov [#allocation6]  }
 0x4bf   : > { %s1445_s14 = sshll.u32 %s1960_s13, 4  ;;  %s1446_s14 = int_to_ptr.vmem [resolvable:$true] %s1445_s14 }
 0x4c0   : > { %s1911_s15 = scalar_lea.vmem %s1446_s14, 64  ;;  %p1918_p10 = scmp.lt.s32.totalorder %s1446_s14, %s1446_s14 }
 0x4c1   : > { %p1912_p6 = scmp.ne.s32.totalorder %s1446_s14, %s1911_s15  ;;  %p1919_p11 = scmp.lt.s32.totalorder %s1911_s15, %s1911_s15 }
 0x4c3   : > { %p1913_p8 = pnand %p1912_p6, %p1811_p7  ;;  %p1920_p12 = por %p1919_p11, %p1918_p10 }
 0x4c5   : > { %p1914_p9 = pneg %p1913_p8 }
 0x4c7   : > { %p1921_p13 = pnand %p1920_p12, %p1914_p9 }
 0x4c9   : > { %1924 = shalt.err (!%p1921_p13)
}
 0x4ca   : > { %s1925_s19 = scalar_lea.hbm %s2390_s12, 64 }
 0x4cb   : > { %p1926_p0 = scmp.ne.s32.totalorder %s2390_s12, %s1925_s19  ;;  %p1931_p3 = scmp.lt.u32.totalorder %s1925_s19, %s2390_s12 }
 0x4cd   : > { %p1927_p1 = pnand %p1926_p0, %p1811_p7 }
 0x4cf   : > { %p1928_p2 = pneg %p1927_p1 }
 0x4d1   : > { %p1933_p4 = pnand %p1931_p3, %p1928_p2 }
 0x4d3   : > { %1936 = shalt.err (!%p1933_p4)
}
 0x4d4   : > { %1806 = dma.vmem_to_hbm [thread:$0]  (%p1811_p7), %s1446_s14, 64, %s2390_s12, [#allocation7], %s1958_s27, %s1958_s27, %s1959_s28  }
 0x4d5   : > { %1942 = dma.done.wait (%p1811_p7), [#allocation5], 64  }
 0x4d6   : > { %1944 = vsyncadd (%p1811_p7), [#allocation5], 4294967232 }
 0x4d7   : > { %1946 = dma.done.wait (%p1811_p7), [#allocation7], 64  }
 0x4d8   : > { %1948 = vsyncadd (%p1811_p7), [#allocation7], 4294967232 }
 0x4d9 PF: > { %s25_s21 = sadd.s32 1, %s1951_s21  }
 0x4da   : > { %p22_p5 = scmp.ge.s32.totalorder %s25_s21, 4  }
 0x4dc   :  { %24 = sbr.rel (!%p22_p5) target bundleno = 2 (0x2), region = 115 }
 0x4e3   :  { %1465 = vsyncpa [#allocation5], 1 }
 0x4e4   :  { %1467 = vsyncpa [#allocation5 + $0x1], 1 }
 0x4e5   :  { %1468 = vsyncpa [#allocation7], 1 }

</bundles_post_ra>
